<compile_context>
chip_gen: v5e
topology: v5e:2x2
jax: 0.10.0
libtpu: 0.0.40
codegen_flags: <defaults>
</compile_context>

<pallas_src>
import functools
import math

import jax
import jax.numpy as jnp
from jax.experimental import pallas as pl
from jax.experimental.pallas import tpu as pltpu


def _dice_sums_kernel_dense(logits_ref, targets_ref, inter_ref, card_ref, *,
                            rows_per_step, total_rows, needs_mask):
    """Fast path: voxels tiled as (rows, 128) lanes; classes are a leading dim.

    logits_ref : (1, C, TR, 128) float   dense voxel tile, one slab per class
    targets_ref: (1, 1, TR, 128) int32   class index per voxel
    inter_ref  : (1, C, 1, 128) float32  resident accumulator sum(probs*onehot)
    card_ref   : (1, C, 1, 128) float32  resident accumulator sum(probs+onehot)
    """
    r = pl.program_id(1)

    @pl.when(r == 0)
    def _():
        inter_ref[...] = jnp.zeros_like(inter_ref)
        card_ref[...] = jnp.zeros_like(card_ref)

    num_classes = logits_ref.shape[1]
    tgt = targets_ref[0, 0]                                     # (TR, 128)
    xs = [logits_ref[0, ci].astype(jnp.float32)
          for ci in range(num_classes)]                          # C x (TR, 128)

    valid = None
    if needs_mask:
        row = jax.lax.broadcasted_iota(jnp.int32, tgt.shape, 0) + r * rows_per_step
        valid = row < total_rows                                 # (TR, 128)
        # Zero padded rows before exp so OOB garbage cannot become inf/nan,
        # and poison padded targets so they never match a class.
        xs = [jnp.where(valid, xi, 0.0) for xi in xs]
        tgt = jnp.where(valid, tgt, -1)

    # Softmax over the class axis: running max / sum over C full vregs (VALU).
    m = xs[0]
    for xi in xs[1:]:
        m = jnp.maximum(m, xi)
    es = [jnp.exp(xi - m) for xi in xs]
    denom = es[0]
    for ei in es[1:]:
        denom = denom + ei
    inv = pl.reciprocal(denom, approx=False)                     # exact, one/voxel
    if needs_mask:
        inv = jnp.where(valid, inv, 0.0)                         # probs -> 0 on pad

    inter_parts, card_parts = [], []
    for ci in range(num_classes):
        p = es[ci] * inv                                         # (TR, 128)
        oh = (tgt == ci).astype(jnp.float32)
        # Collapse only the sublane axis here; lanes reduced in the wrapper.
        inter_parts.append(jnp.sum(p * oh, axis=0, keepdims=True))   # (1, 128)
        card_parts.append(jnp.sum(p + oh, axis=0, keepdims=True))    # (1, 128)

    inter_ref[...] += jnp.stack(inter_parts, axis=0)[None]       # (1, C, 1, 128)
    card_ref[...] += jnp.stack(card_parts, axis=0)[None]


def _dice_sums_kernel_ragged(logits_ref, targets_ref, inter_ref, card_ref, *,
                             tile_rows, total_rows, needs_mask):
    """Fallback for S % 128 != 0: voxels on lanes only, classes on sublanes.

    logits_ref : (1, C, T) float     targets_ref: (1, 1, T) int32
    inter_ref / card_ref : (1, C, 1) float32   resident accumulators
    """
    r = pl.program_id(1)

    @pl.when(r == 0)
    def _():
        inter_ref[...] = jnp.zeros_like(inter_ref)
        card_ref[...] = jnp.zeros_like(card_ref)

    x = logits_ref[...].astype(jnp.float32)            # (1, C, T)
    tgt = targets_ref[...]                             # (1, 1, T)

    if needs_mask:
        col = jax.lax.broadcasted_iota(jnp.int32, tgt.shape, 2) + r * tile_rows
        valid = col < total_rows                        # (1, 1, T)
        x = jnp.where(valid, x, 0.0)

    # Softmax over the class (sublane) axis.
    m = jnp.max(x, axis=1, keepdims=True)
    e = jnp.exp(x - m)
    denom = jnp.sum(e, axis=1, keepdims=True)
    probs = e * pl.reciprocal(denom, approx=False)

    class_ids = jax.lax.broadcasted_iota(jnp.int32, x.shape, 1)
    onehot = tgt == class_ids
    if needs_mask:
        onehot = jnp.logical_and(onehot, valid)
        probs = jnp.where(valid, probs, 0.0)
    onehot_f = onehot.astype(jnp.float32)

    inter_ref[...] += jnp.sum(probs * onehot_f, axis=2, keepdims=True)
    card_ref[...] += jnp.sum(probs + onehot_f, axis=2, keepdims=True)


def dice_loss(logits, targets, *, smooth=1e-5, tile_voxels=None):
    """Exact equivalent of DiceLoss.forward.

    logits : (N, C, D, H, W) float (any float dtype; cast to f32 in-kernel)
    targets: (N, D, H, W) or (N, 1, D, H, W) integer class indices
    """
    if targets.ndim == 5:
        targets = jnp.squeeze(targets, axis=1)
    assert targets.shape[1:] == logits.shape[2:], (targets.shape, logits.shape)
    n, c = logits.shape[0], logits.shape[1]
    s = math.prod(logits.shape[2:])
    t = targets.astype(jnp.int32)

    if tile_voxels is None:
        # Double-buffered input blocks cost 2 * 4 * (C + 1) bytes per voxel;
        # stay well under the v5e 16 MiB scoped-VMEM default.
        budget = 8 * 1024 * 1024
        tile_voxels = max(1024, min(budget // (8 * (c + 1)), 1 << 18))

    if s % 128 == 0:
        # Dense fast path: voxels folded onto (sublanes, lanes).
        rows = s // 128
        x = logits.reshape(n, c, rows, 128)          # free reshape, no transpose
        tt = t.reshape(n, 1, rows, 128)
        tr = max(1, tile_voxels // 128)
        if tr >= rows:
            tr = rows                                # full dim -> always legal
        else:
            tr = min(max(8, (tr // 8) * 8), rows)    # sublane-aligned tile
        grid_r = pl.cdiv(rows, tr)
        needs_mask = (rows % tr) != 0
        kernel = functools.partial(_dice_sums_kernel_dense, rows_per_step=tr,
                                   total_rows=rows, needs_mask=needs_mask)
        in_specs = [pl.BlockSpec((1, c, tr, 128), lambda i, r: (i, 0, r, 0)),
                    pl.BlockSpec((1, 1, tr, 128), lambda i, r: (i, 0, r, 0))]
        out_spec = pl.BlockSpec((1, c, 1, 128), lambda i, r: (i, 0, 0, 0))
        out_dims = (n, c, 1, 128)
    else:
        # Ragged fallback: voxels on lanes only, classes on sublanes.
        x = logits.reshape(n, c, s)
        tt = t.reshape(n, 1, s)
        tile = max(128, (tile_voxels // 128) * 128)
        tile = min(tile, s)                          # == s if s small / unaligned
        grid_r = pl.cdiv(s, tile)
        needs_mask = (s % tile) != 0
        kernel = functools.partial(_dice_sums_kernel_ragged, tile_rows=tile,
                                   total_rows=s, needs_mask=needs_mask)
        in_specs = [pl.BlockSpec((1, c, tile), lambda i, r: (i, 0, r)),
                    pl.BlockSpec((1, 1, tile), lambda i, r: (i, 0, r))]
        out_spec = pl.BlockSpec((1, c, 1), lambda i, r: (i, 0, 0))
        out_dims = (n, c, 1)

    inter, card = pl.pallas_call(
        kernel,
        out_shape=(jax.ShapeDtypeStruct(out_dims, jnp.float32),
                   jax.ShapeDtypeStruct(out_dims, jnp.float32)),
        grid_spec=pltpu.PrefetchScalarGridSpec(
            num_scalar_prefetch=0,
            grid=(n, grid_r),
            in_specs=in_specs,
            out_specs=[out_spec, out_spec],
        ),
        compiler_params=pltpu.CompilerParams(
            dimension_semantics=("parallel", "arbitrary")),
    )(x, tt)

    inter = jnp.sum(inter.reshape(n, c, -1), axis=(0, 2))        # (C,)
    card = jnp.sum(card.reshape(n, c, -1), axis=(0, 2))          # (C,)
    dice = (2.0 * inter + smooth) / (card + smooth)
    return 1.0 - jnp.mean(dice)


def _reference_dice_loss(logits, targets, smooth=1e-5):
    """Pure-JAX reference mirroring the PyTorch module."""
    if targets.ndim == 5:
        targets = jnp.squeeze(targets, axis=1)
    c = logits.shape[1]
    probs = jax.nn.softmax(logits.astype(jnp.float32), axis=1)
    onehot = jnp.transpose(jax.nn.one_hot(targets, c, dtype=jnp.float32),
                           (0, 4, 1, 2, 3))
    dims = (0, 2, 3, 4)
    inter = jnp.sum(probs * onehot, dims)
    card = jnp.sum(probs + onehot, dims)
    dice = (2.0 * inter + smooth) / (card + smooth)
    return 1.0 - jnp.mean(dice)


if __name__ == "__main__":
    key = jax.random.PRNGKey(0)
    k1, k2, k3, k4, k5, k6 = jax.random.split(key, 6)

    # Case 1: 128-aligned spatial size -> dense (rows, 128) fast path.
    N, C, D, H, W = 2, 4, 8, 16, 16                 # S = 2048
    logits = jax.random.normal(k1, (N, C, D, H, W), dtype=jnp.float32)
    targets = jax.random.randint(k2, (N, 1, D, H, W), 0, C, dtype=jnp.int32)
    loss = jax.block_until_ready(dice_loss(logits, targets))
    ref = jax.block_until_ready(_reference_dice_loss(logits, targets))
    assert jnp.allclose(loss, ref, atol=1e-5, rtol=1e-5), (loss, ref)

    # Case 2: 128-aligned, but the row tile does not divide the row count ->
    # dense fast path with a masked tail (and an odd class count).
    N2, C2, D2, H2, W2 = 1, 5, 8, 16, 24            # S = 3072, rows = 24, TR = 16
    logits2 = jax.random.normal(k3, (N2, C2, D2, H2, W2), dtype=jnp.float32)
    targets2 = jax.random.randint(k4, (N2, D2, H2, W2), 0, C2, dtype=jnp.int32)
    loss2 = jax.block_until_ready(dice_loss(logits2, targets2, tile_voxels=2048))
    ref2 = jax.block_until_ready(_reference_dice_loss(logits2, targets2))
    assert jnp.allclose(loss2, ref2, atol=1e-5, rtol=1e-5), (loss2, ref2)

    # Case 3: ragged spatial size (S % 128 != 0) -> rank-3 masked fallback.
    N3, C3, D3, H3, W3 = 1, 3, 4, 10, 9             # S = 360, tile = 256 -> mask
    logits3 = jax.random.normal(k5, (N3, C3, D3, H3, W3), dtype=jnp.float32)
    targets3 = jax.random.randint(k6, (N3, D3, H3, W3), 0, C3, dtype=jnp.int32)
    loss3 = jax.block_until_ready(dice_loss(logits3, targets3, tile_voxels=256))
    ref3 = jax.block_until_ready(_reference_dice_loss(logits3, targets3))
    assert jnp.allclose(loss3, ref3, atol=1e-5, rtol=1e-5), (loss3, ref3)

    print("KERNEL_OK")
</pallas_src>

<mosaic_0001>
module attributes {stable_mosaic.version = 11 : i64} {
  func.func @_dice_sums_kernel_dense(%arg0: i32, %arg1: i32, %arg2: memref<1x4x16x128xf32, #tpu.memory_space<vmem>>, %arg3: memref<1x1x16x128xi32, #tpu.memory_space<vmem>>, %arg4: memref<1x4x1x128xf32, #tpu.memory_space<vmem>>, %arg5: memref<1x4x1x128xf32, #tpu.memory_space<vmem>>) attributes {dimension_semantics = [#tpu.dimension_semantics<parallel>, #tpu.dimension_semantics<arbitrary>], iteration_bounds = array<i64: 2, 1>, scalar_prefetch = 0 : i64, scratch_operands = 0 : i64, tpu.core_type = #tpu.core_type<tc>, window_params = [{transform_indices = @transform_0, window_bounds = array<i64: 1, 4, 16, 128>}, {transform_indices = @transform_1, window_bounds = array<i64: 1, 1, 16, 128>}, {transform_indices = @transform_2, window_bounds = array<i64: 1, 4, 1, 128>}, {transform_indices = @transform_3, window_bounds = array<i64: 1, 4, 1, 128>}]} {
    %c0_i32 = arith.constant 0 : i32
    %0 = arith.cmpi eq, %arg1, %c0_i32 : i32
    %1 = arith.extui %0 : i1 to i32
    %c0_i32_0 = arith.constant 0 : i32
    %2 = arith.cmpi ne, %1, %c0_i32_0 : i32
    scf.if %2 {
      %cst_41 = arith.constant 0.000000e+00 : f32
      %90 = vector.broadcast %cst_41 : f32 to vector<1x4x1x128xf32>
      %c0_42 = arith.constant 0 : index
      %c0_43 = arith.constant 0 : index
      %c0_44 = arith.constant 0 : index
      %c0_45 = arith.constant 0 : index
      %91 = vector.load %arg4[%c0_42, %c0_43, %c0_44, %c0_45] : memref<1x4x1x128xf32, #tpu.memory_space<vmem>>, vector<1x4x1x128xf32>
      tpu.vector_store %arg4[%c0_42, %c0_43, %c0_44, %c0_45], %90 {strides = array<i32>} : memref<1x4x1x128xf32, #tpu.memory_space<vmem>>, vector<1x4x1x128xf32>,
      %cst_46 = arith.constant 0.000000e+00 : f32
      %92 = vector.broadcast %cst_46 : f32 to vector<1x4x1x128xf32>
      %c0_47 = arith.constant 0 : index
      %c0_48 = arith.constant 0 : index
      %c0_49 = arith.constant 0 : index
      %c0_50 = arith.constant 0 : index
      %93 = vector.load %arg5[%c0_47, %c0_48, %c0_49, %c0_50] : memref<1x4x1x128xf32, #tpu.memory_space<vmem>>, vector<1x4x1x128xf32>
      tpu.vector_store %arg5[%c0_47, %c0_48, %c0_49, %c0_50], %92 {strides = array<i32>} : memref<1x4x1x128xf32, #tpu.memory_space<vmem>>, vector<1x4x1x128xf32>,
    } else {
    }
    %c0 = arith.constant 0 : index
    %c0_1 = arith.constant 0 : index
    %c0_2 = arith.constant 0 : index
    %c0_3 = arith.constant 0 : index
    %3 = vector.load %arg3[%c0, %c0_1, %c0_2, %c0_3] : memref<1x1x16x128xi32, #tpu.memory_space<vmem>>, vector<1x1x16x128xi32>
    %4 = vector.shape_cast %3 : vector<1x1x16x128xi32> to vector<16x128xi32>
    %c0_4 = arith.constant 0 : index
    %c0_5 = arith.constant 0 : index
    %c0_6 = arith.constant 0 : index
    %c0_7 = arith.constant 0 : index
    %5 = vector.load %arg2[%c0_4, %c0_5, %c0_6, %c0_7] : memref<1x4x16x128xf32, #tpu.memory_space<vmem>>, vector<1x1x16x128xf32>
    %6 = vector.shape_cast %5 : vector<1x1x16x128xf32> to vector<16x128xf32>
    %c0_8 = arith.constant 0 : index
    %c1 = arith.constant 1 : index
    %c0_9 = arith.constant 0 : index
    %c0_10 = arith.constant 0 : index
    %7 = vector.load %arg2[%c0_8, %c1, %c0_9, %c0_10] : memref<1x4x16x128xf32, #tpu.memory_space<vmem>>, vector<1x1x16x128xf32>
    %8 = vector.shape_cast %7 : vector<1x1x16x128xf32> to vector<16x128xf32>
    %c0_11 = arith.constant 0 : index
    %c2 = arith.constant 2 : index
    %c0_12 = arith.constant 0 : index
    %c0_13 = arith.constant 0 : index
    %9 = vector.load %arg2[%c0_11, %c2, %c0_12, %c0_13] : memref<1x4x16x128xf32, #tpu.memory_space<vmem>>, vector<1x1x16x128xf32>
    %10 = vector.shape_cast %9 : vector<1x1x16x128xf32> to vector<16x128xf32>
    %c0_14 = arith.constant 0 : index
    %c3 = arith.constant 3 : index
    %c0_15 = arith.constant 0 : index
    %c0_16 = arith.constant 0 : index
    %11 = vector.load %arg2[%c0_14, %c3, %c0_15, %c0_16] : memref<1x4x16x128xf32, #tpu.memory_space<vmem>>, vector<1x1x16x128xf32>
    %12 = vector.shape_cast %11 : vector<1x1x16x128xf32> to vector<16x128xf32>
    %13 = arith.maximumf %6, %8 : vector<16x128xf32>
    %14 = arith.maximumf %13, %10 : vector<16x128xf32>
    %15 = arith.maximumf %14, %12 : vector<16x128xf32>
    %16 = arith.subf %6, %15 : vector<16x128xf32>
    %17 = math.exp %16 : vector<16x128xf32>
    %18 = arith.subf %8, %15 : vector<16x128xf32>
    %19 = math.exp %18 : vector<16x128xf32>
    %20 = arith.subf %10, %15 : vector<16x128xf32>
    %21 = math.exp %20 : vector<16x128xf32>
    %22 = arith.subf %12, %15 : vector<16x128xf32>
    %23 = math.exp %22 : vector<16x128xf32>
    %24 = arith.addf %17, %19 : vector<16x128xf32>
    %25 = arith.addf %24, %21 : vector<16x128xf32>
    %26 = arith.addf %25, %23 : vector<16x128xf32>
    %27 = tpu.reciprocal %26 : vector<16x128xf32> -> vector<16x128xf32>
    %28 = arith.mulf %17, %27 : vector<16x128xf32>
    %c0_i32_17 = arith.constant 0 : i32
    %29 = vector.broadcast %c0_i32_17 : i32 to vector<16x128xi32>
    %30 = arith.cmpi eq, %4, %29 : vector<16x128xi32>
    %31 = arith.extui %30 : vector<16x128xi1> to vector<16x128xi32>
    %32 = arith.sitofp %31 : vector<16x128xi32> to vector<16x128xf32>
    %33 = arith.mulf %28, %32 : vector<16x128xf32>
    %cst = arith.constant dense<0.000000e+00> : vector<128xf32>
    %34 = vector.multi_reduction <add>, %33, %cst [0] : vector<16x128xf32> to vector<128xf32>
    %35 = vector.shape_cast %34 : vector<128xf32> to vector<1x128xf32>
    %36 = arith.addf %28, %32 : vector<16x128xf32>
    %cst_18 = arith.constant dense<0.000000e+00> : vector<128xf32>
    %37 = vector.multi_reduction <add>, %36, %cst_18 [0] : vector<16x128xf32> to vector<128xf32>
    %38 = vector.shape_cast %37 : vector<128xf32> to vector<1x128xf32>
    %39 = arith.mulf %19, %27 : vector<16x128xf32>
    %c1_i32 = arith.constant 1 : i32
    %40 = vector.broadcast %c1_i32 : i32 to vector<16x128xi32>
    %41 = arith.cmpi eq, %4, %40 : vector<16x128xi32>
    %42 = arith.extui %41 : vector<16x128xi1> to vector<16x128xi32>
    %43 = arith.sitofp %42 : vector<16x128xi32> to vector<16x128xf32>
    %44 = arith.mulf %39, %43 : vector<16x128xf32>
    %cst_19 = arith.constant dense<0.000000e+00> : vector<128xf32>
    %45 = vector.multi_reduction <add>, %44, %cst_19 [0] : vector<16x128xf32> to vector<128xf32>
    %46 = vector.shape_cast %45 : vector<128xf32> to vector<1x128xf32>
    %47 = arith.addf %39, %43 : vector<16x128xf32>
    %cst_20 = arith.constant dense<0.000000e+00> : vector<128xf32>
    %48 = vector.multi_reduction <add>, %47, %cst_20 [0] : vector<16x128xf32> to vector<128xf32>
    %49 = vector.shape_cast %48 : vector<128xf32> to vector<1x128xf32>
    %50 = arith.mulf %21, %27 : vector<16x128xf32>
    %c2_i32 = arith.constant 2 : i32
    %51 = vector.broadcast %c2_i32 : i32 to vector<16x128xi32>
    %52 = arith.cmpi eq, %4, %51 : vector<16x128xi32>
    %53 = arith.extui %52 : vector<16x128xi1> to vector<16x128xi32>
    %54 = arith.sitofp %53 : vector<16x128xi32> to vector<16x128xf32>
    %55 = arith.mulf %50, %54 : vector<16x128xf32>
    %cst_21 = arith.constant dense<0.000000e+00> : vector<128xf32>
    %56 = vector.multi_reduction <add>, %55, %cst_21 [0] : vector<16x128xf32> to vector<128xf32>
    %57 = vector.shape_cast %56 : vector<128xf32> to vector<1x128xf32>
    %58 = arith.addf %50, %54 : vector<16x128xf32>
    %cst_22 = arith.constant dense<0.000000e+00> : vector<128xf32>
    %59 = vector.multi_reduction <add>, %58, %cst_22 [0] : vector<16x128xf32> to vector<128xf32>
    %60 = vector.shape_cast %59 : vector<128xf32> to vector<1x128xf32>
    %61 = arith.mulf %23, %27 : vector<16x128xf32>
    %c3_i32 = arith.constant 3 : i32
    %62 = vector.broadcast %c3_i32 : i32 to vector<16x128xi32>
    %63 = arith.cmpi eq, %4, %62 : vector<16x128xi32>
    %64 = arith.extui %63 : vector<16x128xi1> to vector<16x128xi32>
    %65 = arith.sitofp %64 : vector<16x128xi32> to vector<16x128xf32>
    %66 = arith.mulf %61, %65 : vector<16x128xf32>
    %cst_23 = arith.constant dense<0.000000e+00> : vector<128xf32>
    %67 = vector.multi_reduction <add>, %66, %cst_23 [0] : vector<16x128xf32> to vector<128xf32>
    %68 = vector.shape_cast %67 : vector<128xf32> to vector<1x128xf32>
    %69 = arith.addf %61, %65 : vector<16x128xf32>
    %cst_24 = arith.constant dense<0.000000e+00> : vector<128xf32>
    %70 = vector.multi_reduction <add>, %69, %cst_24 [0] : vector<16x128xf32> to vector<128xf32>
    %71 = vector.shape_cast %70 : vector<128xf32> to vector<1x128xf32>
    %c0_25 = arith.constant 0 : index
    %c0_26 = arith.constant 0 : index
    %c0_27 = arith.constant 0 : index
    %c0_28 = arith.constant 0 : index
    %72 = vector.load %arg4[%c0_25, %c0_26, %c0_27, %c0_28] : memref<1x4x1x128xf32, #tpu.memory_space<vmem>>, vector<1x4x1x128xf32>
    %73 = vector.shape_cast %35 : vector<1x128xf32> to vector<1x1x128xf32>
    %74 = vector.shape_cast %46 : vector<1x128xf32> to vector<1x1x128xf32>
    %75 = vector.shape_cast %57 : vector<1x128xf32> to vector<1x1x128xf32>
    %76 = vector.shape_cast %68 : vector<1x128xf32> to vector<1x1x128xf32>
    %77 = tpu.concatenate %73, %74, %75, %76 in 0 : vector<1x1x128xf32>, vector<1x1x128xf32>, vector<1x1x128xf32>, vector<1x1x128xf32> -> vector<4x1x128xf32>
    %78 = vector.shape_cast %77 : vector<4x1x128xf32> to vector<1x4x1x128xf32>
    %79 = arith.addf %72, %78 : vector<1x4x1x128xf32>
    %c0_29 = arith.constant 0 : index
    %c0_30 = arith.constant 0 : index
    %c0_31 = arith.constant 0 : index
    %c0_32 = arith.constant 0 : index
    %80 = vector.load %arg4[%c0_29, %c0_30, %c0_31, %c0_32] : memref<1x4x1x128xf32, #tpu.memory_space<vmem>>, vector<1x4x1x128xf32>
    tpu.vector_store %arg4[%c0_29, %c0_30, %c0_31, %c0_32], %79 {strides = array<i32>} : memref<1x4x1x128xf32, #tpu.memory_space<vmem>>, vector<1x4x1x128xf32>,
    %c0_33 = arith.constant 0 : index
    %c0_34 = arith.constant 0 : index
    %c0_35 = arith.constant 0 : index
    %c0_36 = arith.constant 0 : index
    %81 = vector.load %arg5[%c0_33, %c0_34, %c0_35, %c0_36] : memref<1x4x1x128xf32, #tpu.memory_space<vmem>>, vector<1x4x1x128xf32>
    %82 = vector.shape_cast %38 : vector<1x128xf32> to vector<1x1x128xf32>
    %83 = vector.shape_cast %49 : vector<1x128xf32> to vector<1x1x128xf32>
    %84 = vector.shape_cast %60 : vector<1x128xf32> to vector<1x1x128xf32>
    %85 = vector.shape_cast %71 : vector<1x128xf32> to vector<1x1x128xf32>
    %86 = tpu.concatenate %82, %83, %84, %85 in 0 : vector<1x1x128xf32>, vector<1x1x128xf32>, vector<1x1x128xf32>, vector<1x1x128xf32> -> vector<4x1x128xf32>
    %87 = vector.shape_cast %86 : vector<4x1x128xf32> to vector<1x4x1x128xf32>
    %88 = arith.addf %81, %87 : vector<1x4x1x128xf32>
    %c0_37 = arith.constant 0 : index
    %c0_38 = arith.constant 0 : index
    %c0_39 = arith.constant 0 : index
    %c0_40 = arith.constant 0 : index
    %89 = vector.load %arg5[%c0_37, %c0_38, %c0_39, %c0_40] : memref<1x4x1x128xf32, #tpu.memory_space<vmem>>, vector<1x4x1x128xf32>
    tpu.vector_store %arg5[%c0_37, %c0_38, %c0_39, %c0_40], %88 {strides = array<i32>} : memref<1x4x1x128xf32, #tpu.memory_space<vmem>>, vector<1x4x1x128xf32>,
    return
  }
  func.func @transform_0(%arg0: i32, %arg1: i32) -> (i32, i32, i32, i32) {
    %c0_i32 = arith.constant 0 : i32
    %c0_i32_0 = arith.constant 0 : i32
    %c0_i32_1 = arith.constant 0 : i32
    return %arg0, %c0_i32, %arg1, %c0_i32_0 : i32, i32, i32, i32
  }
  func.func @transform_1(%arg0: i32, %arg1: i32) -> (i32, i32, i32, i32) {
    %c0_i32 = arith.constant 0 : i32
    %c0_i32_0 = arith.constant 0 : i32
    %c0_i32_1 = arith.constant 0 : i32
    return %arg0, %c0_i32, %arg1, %c0_i32_0 : i32, i32, i32, i32
  }
  func.func @transform_2(%arg0: i32, %arg1: i32) -> (i32, i32, i32, i32) {
    %c0_i32 = arith.constant 0 : i32
    %c0_i32_0 = arith.constant 0 : i32
    %c0_i32_1 = arith.constant 0 : i32
    %c0_i32_2 = arith.constant 0 : i32
    return %arg0, %c0_i32, %c0_i32_0, %c0_i32_1 : i32, i32, i32, i32
  }
  func.func @transform_3(%arg0: i32, %arg1: i32) -> (i32, i32, i32, i32) {
    %c0_i32 = arith.constant 0 : i32
    %c0_i32_0 = arith.constant 0 : i32
    %c0_i32_1 = arith.constant 0 : i32
    %c0_i32_2 = arith.constant 0 : i32
    return %arg0, %c0_i32, %c0_i32_0, %c0_i32_1 : i32, i32, i32, i32
  }
}

</mosaic_0001>

<bundles_post_ra>
// kernel: tpu_custom_call.1
= control target key start
LH: loop header
LB: loop body
LE: loop exit
PB: predicated region body
PF: predicated region fallthrough
CT: control target
= control target key end

     0   :  { %s1254_s0 = inlined_call_operand.hbm [shape: f32[2,4,16,128], index: 0, kind: input, shape index: {}]   ;;  %s1255_s1 = inlined_call_operand.hbm [shape: s32[2,1,16,128], index: 1, kind: input, shape index: {}]   ;;  %s1256_s2 = inlined_call_operand.hbm [shape: f32[2,4,1,128], index: 2, kind: output, shape index: {0}]   ;;  %s1257_s3 = inlined_call_operand.hbm [shape: f32[2,4,1,128], index: 3, kind: output, shape index: {1}]  }
   0x1   :  { %1258 = sst [smem:[#allocation14_spill]] %s1254_s0 }
   0x2   :  { %9 = vsyncpa [#allocation3], 0 }
   0x3   :  { %11 = vsyncpa [#allocation3 + $0x1], 0 }
   0x4   :  { %12 = vsyncpa [#allocation6], 0 }
   0x5   :  { %14 = vsyncpa [#allocation6 + $0x1], 0 }
   0x6   :  { %15 = vsyncpa [#allocation4], 0 }
   0x7   :  { %17 = vsyncpa [#allocation4 + $0x1], 0 }
   0x8   :  { %18 = vsyncpa [#allocation9], 0 }
   0x9   :  { %20 = vsyncpa [#allocation9 + $0x1], 0  ;;  %s1001_s12 = smov 0   ;;  %s1003_s13 = smov 0  }
   0xa   :  { %s1005_s14 = smov 0   ;;  %s1007_s15 = smov 0  }
   0xb   :  { %s1009_s16 = smov 0   ;;  %s1011_s17 = smov 0  }
   0xc LB: > { %s662_s18 = sadd.s32 4294967295, %s974_s17   ;;  %s663_s19 = sadd.s32 4294967294, %s974_s17   ;;  %s974_s17 = sphi %s1011_s17, %s26_s17   ;;  %s970_s16 = sphi %s1009_s16, %s1273_s16   ;;  %s966_s15 = sphi %s1007_s15, %s1272_s15   ;;  %s962_s14 = sphi %s1005_s14, %s1271_s14   ;;  %s958_s13 = sphi %s1003_s13, %s1270_s13   ;;  %s954_s12 = sphi %s1001_s12, %s1269_s12  }
   0xd   : > { %s38_s20 = sadd.s32 1, %s970_s16  ;;  %s47_s21 = sadd.s32 1, %s962_s14 }
   0xe   : > { %p40_p0 = scmp.ge.s32.totalorder %s38_s20, 2  ;;  %p54_p1 = scmp.ne.s32.totalorder %s962_s14, %s958_s13 }
   0xf   : > { %p55_p2 = scmp.eq.s32.totalorder %s974_s17, 0  ;;  %p60_p3 = scmp.ne.s32.totalorder %s958_s13, %s954_s12 }
  0x10   : > { %s1275_s20 = smov (%p40_p0, %s38_s20), 0  ;;  %p61_p5 = scmp.eq.s32.totalorder %s662_s18, 0 }
  0x11   : > { %p1042_p4 = por %p55_p2, %p54_p1  ;;  %s42_s23 = ssub.s32 %s970_s16, %s1275_s20 }
  0x12   : > { %p112_p6 = scmp.eq.s32.totalorder %s662_s18, 1  ;;  %p45_p7 = scmp.eq.s32.totalorder %s42_s23, 0 }
  0x13   : > { %p1048_p8 = por %p61_p5, %p60_p3  ;;  %p118_p10 = scmp.eq.s32.totalorder %s663_s19, 1 }
  0x14   : > { %p1052_p9 = por %p112_p6, %p54_p1  ;;  %p665_p12 = scmp.ge.s32.totalorder %s974_s17, 2 }
  0x15   : > { %s1057_s26 = scalar_select %p45_p7, %s962_s14, %s47_s21  }
  0x16   : > { %p1059_p11 = por %p118_p10, %p60_p3  ;;  %p721_p13 = scmp.lt.s32.totalorder %s974_s17, 2 }
  0x17   : > { %s1066_s28 = sand.u32 1, %s962_s14   ;;  %s697_s30 = sshll.u32 %s970_s16, 6 }
  0x18   : > { %s666_s29 = sshll.u32 %s1066_s28, 6  ;;  %s1263_s0 = sld [smem:[#allocation14_spill]] }
  0x19   : > { %s168_s7 = scalar_lea.vmem [#allocation2], %s666_s29  ;;  %p1075_p0 = pnand %p721_p13, %p1042_p4 }
  0x1a   : > { %s178_s8 = sshll.u32 %s168_s7, 4  ;;  %p672_p1 = scmp.ge.s32.totalorder %s974_s17, 1  ;;  %s179_s8 = int_to_ptr.vmem [resolvable:$true] %s178_s8 }
  0x1b   : > { %s165_s11 = scalar_lea.sflag [#allocation3], %s1066_s28  ;;  %s976_s18 = smov 128  }
  0x1c   : > { %s977_s19 = smov 8   ;;  %p210_p2 = scmp.lt.s32.totalorder %s974_s17, 3 }
  0x1d   : > { %s669_s21 = sshll.u32 %s1066_s28, 4  ;;  %s698_s23 = sshll.u32 %s970_s16, 4 }
  0x1e   : > { %s175_s6 = scalar_lea.hbm %s1263_s0, %s697_s30  ;;  %p211_p3 = pnand %p672_p1, %p210_p2 }
  0x1f   : > { %s176_s9 = sshll.u32 %s175_s6, 4  ;;  %s199_s22 = scalar_lea.hbm %s1255_s1, %s698_s23  ;;  %s177_s9 = int_to_ptr.hbm [resolvable:$true] %s176_s9 }
  0x20   : > { %710 = dma.hbm_to_vmem [thread:$0]  (!%p1075_p0), %s177_s9, 1024, %s179_s8, %s165_s11, %s976_s18, %s976_s18, %s977_s19  }
  0x21   : > { %s192_s4 = scalar_lea.vmem [#allocation5], %s669_s21  ;;  %s200_s6 = sshll.u32 %s199_s22, 4  ;;  %s201_s6 = int_to_ptr.hbm [resolvable:$true] %s200_s6 }
  0x22   : > { %s202_s5 = sshll.u32 %s192_s4, 4  ;;  %s189_s7 = scalar_lea.sflag [#allocation6], %s1066_s28  ;;  %s203_s5 = int_to_ptr.vmem [resolvable:$true] %s202_s5 }
  0x23   : > { %713 = dma.hbm_to_vmem [thread:$0]  (!%p1075_p0), %s201_s6, 256, %s203_s5, %s189_s7, %s976_s18, %s976_s18, %s977_s19  }
  0x24   : > { %214 = sbr.rel (%p211_p3) target bundleno = 135 (0x87), region = 28  ;;  %s1093_s8 = sand.u32 (!%p211_p3), 1, %s958_s13  }
  0x25   : > { %s673_s9 = sshll.u32 (!%p211_p3), %s1093_s8, 6  ;;  %s217_s11 = scalar_lea.sflag (!%p211_p3), [#allocation3], %s1093_s8 }
  0x26   : > { %s220_s0 = scalar_lea.vmem (!%p211_p3), [#allocation2], %s673_s9 }
  0x29   : > { %937 = dma.done.wait (%p1048_p8), %s217_s11, 1024  }
  0x2a   : > { %939 = vsyncadd (%p1048_p8), %s217_s11, 4294966272  ;;  %s674_s28 = sshll.u32 %s1093_s8, 4  ;;  %s227_s10 = scalar_lea.sflag [#allocation6], %s1093_s8 }
  0x2b   : > { %s1103_s18 = scalar_lea.vmem [#allocation5], %s674_s28 }
  0x2c   : > { %941 = dma.done.wait (%p1048_p8), %s227_s10, 256  }
  0x2d   : > { %943 = vsyncadd (%p1048_p8), %s227_s10, 4294967040  ;;  %s675_s19 = sshll.u32 %s1093_s8, 2  ;;  %v978_v0 = vmov 0.0   ;;  %v280_v1 = vld [vmem:[%s220_s0] sm:$0xff]  ;;  %v281_v2 = vld [vmem:[%s220_s0 + $0x8] sm:$0xff]  ;;  %s484_s11 = scalar_lea.sflag [#allocation4], %s1093_s8 }
  0x2e   : > { %s1110_s21 = scalar_lea.vmem [#allocation7], %s675_s19  ;;  %s1120_s23 = scalar_lea.vmem [#allocation8], %s675_s19  ;;  %v677_v3 = vld [vmem:[%s220_s0 + $0x10] sm:$0xff]  ;;  %v678_v4 = vld [vmem:[%s220_s0 + $0x18] sm:$0xff]  ;;  %v679_v5 = vld [vmem:[%s220_s0 + $0x20] sm:$0xff] }
  0x2f   : > { %270 = vst [vmem:[%s1110_s21] sm:$0x1] %v978_v0  ;;  %v680_v6 = vld [vmem:[%s220_s0 + $0x28] sm:$0xff]  ;;  %v291_v7 = vmax.f32 %v280_v1, %v677_v3  ;;  %v292_v8 = vmax.f32 %v281_v2, %v678_v4  ;;  %v681_v9 = vld [vmem:[%s220_s0 + $0x30] sm:$0xff]  ;;  %v682_v10 = vld [vmem:[%s220_s0 + $0x38] sm:$0xff]  ;;  %s693_s0 = sshll.u32 %s966_s15, 2  ;;  %s500_s22 = sshll.u32 %s1110_s21, 4  ;;  %s1193_s22 = int_to_ptr.vmem [resolvable:$true] %s500_s22 }
  0x30   : > { %271 = vst [vmem:[%s1110_s21 + $0x1] sm:$0x1] %v978_v0  ;;  %v278_v45 = vld [vmem:[%s1103_s18] sm:$0xff]  ;;  %v279_v46 = vld [vmem:[%s1103_s18 + $0x8] sm:$0xff]  ;;  %s499_s30 = scalar_lea.hbm %s1256_s2, %s693_s0  ;;  %s515_s6 = scalar_lea.hbm %s1257_s3, %s693_s0 }
  0x31   : > { %272 = vst [vmem:[%s1110_s21 + $0x2] sm:$0x1] %v978_v0  ;;  %v293_v11 = vmax.f32 %v291_v7, %v679_v5  ;;  %v294_v12 = vmax.f32 %v292_v8, %v680_v6  ;;  %vm357_vm0 = vcmp.eq.s32.totalorder %v278_v45, 0  ;;  %vm358_vm1 = vcmp.eq.s32.totalorder %v279_v46, 0  ;;  %s502_s7 = sshll.u32 %s499_s30, 4  ;;  %s516_s15 = sshll.u32 %s1120_s23, 4  ;;  %s503_s7 = int_to_ptr.hbm [resolvable:$true] %s502_s7  ;;  %s1200_s15 = int_to_ptr.vmem [resolvable:$true] %s516_s15 }
  0x32   : > { %273 = vst [vmem:[%s1110_s21 + $0x3] sm:$0x1] %v978_v0  ;;  %vm383_vm3 = vcmp.eq.s32.totalorder %v278_v45, 1  ;;  %v683_v58 = vsel %vm357_vm0, 1.0, %v978_v0  ;;  %vm384_vm7 = vcmp.eq.s32.totalorder %v279_v46, 1  ;;  %vm409_vm8 = vcmp.eq.s32.totalorder %v278_v45, 2 }
  0x33   : > { %274 = vst [vmem:[%s1120_s23] sm:$0x1] %v978_v0  ;;  %v295_v13 = vmax.f32 %v293_v11, %v681_v9  ;;  %v296_v14 = vmax.f32 %v294_v12, %v682_v10  ;;  %vm410_vm10 = vcmp.eq.s32.totalorder %v279_v46, 2  ;;  %vm435_vm11 = vcmp.eq.s32.totalorder %v278_v45, 3  ;;  %s518_s9 = sshll.u32 %s515_s6, 4  ;;  %s870_s28 = sshra.s32 %s503_s7, 4  ;;  %s1202_s9 = int_to_ptr.hbm [resolvable:$true] %s518_s9  ;;  %s871_s28 = int_to_ptr.hbm [resolvable:$true] %s870_s28 }
  0x34   : > { %275 = vst [vmem:[%s1120_s23 + $0x1] sm:$0x1] %v978_v0  ;;  %vm436_vm14 = vcmp.eq.s32.totalorder %v279_v46, 3  ;;  %v687_v7 = vsel %vm409_vm8, 1.0, %v978_v0  ;;  %v688_v8 = vsel %vm410_vm10, 1.0, %v978_v0  ;;  %v689_v11 = vsel %vm435_vm11, 1.0, %v978_v0  ;;  %p877_p7 = scmp.lt.s32.totalorder %s871_s28, %s1256_s2 }
  0x35   : > { %276 = vst [vmem:[%s1120_s23 + $0x2] sm:$0x1] %v978_v0  ;;  %v297_v15 = vsub.f32 %v280_v1, %v295_v13  ;;  %v298_v16 = vsub.f32 %v281_v2, %v296_v14  ;;  %v303_v17 = vsub.f32 %v677_v3, %v295_v13  ;;  %v304_v18 = vsub.f32 %v678_v4, %v296_v14  ;;  %s872_s10 = scalar_lea.hbm %s871_s28, 4 }
  0x36   : > { %277 = vst [vmem:[%s1120_s23 + $0x3] sm:$0x1] %v978_v0  ;;  %v309_v19 = vsub.f32 %v679_v5, %v295_v13  ;;  %v310_v20 = vsub.f32 %v680_v6, %v296_v14  ;;  %v315_v24 = vsub.f32 %v681_v9, %v295_v13  ;;  %v316_v26 = vsub.f32 %v682_v10, %v296_v14  ;;  %p873_p4 = scmp.ne.s32.totalorder %s871_s28, %s872_s10 }
  0x37   : > { %v299_v21 = vmul.f32 1.442695, %v297_v15  ;;  %v301_v22 = vmul.f32 1.442695, %v298_v16  ;;  %v305_v23 = vmul.f32 1.442695, %v303_v17 }
  0x38   : > { %v307_v25 = vmul.f32 1.442695, %v304_v18  ;;  %v311_v27 = vmul.f32 1.442695, %v309_v19  ;;  %v313_v28 = vmul.f32 1.442695, %v310_v20  ;;  %p874_p5 = pnand %p873_p4, %p1052_p9 }
  0x39   : > { %776 = vpow2.f32 %v299_v21  ;;  %v317_v29 = vmul.f32 1.442695, %v315_v24  ;;  %v319_v30 = vmul.f32 1.442695, %v316_v26  ;;  %v684_v3 = vsel %vm358_vm1, 1.0, %v978_v0 }
  0x3a   : > { %778 = vpow2.f32 %v301_v22  ;;  %v685_v4 = vsel %vm383_vm3, 1.0, %v978_v0  ;;  %v686_v6 = vsel %vm384_vm7, 1.0, %v978_v0  ;;  %v690_v12 = vsel %vm436_vm14, 1.0, %v978_v0  ;;  %p875_p6 = pneg %p874_p5 }
  0x3b   : > { %780 = vpow2.f32 %v305_v23 }
  0x3c   : > { %782 = vpow2.f32 %v307_v25 }
  0x3d   : > { %784 = vpow2.f32 %v311_v27 }
  0x3e   : > { %786 = vpow2.f32 %v313_v28 }
  0x3f   : > { %v1130_v31 = vpop.eup %776  ;;  %788 = vpow2.f32 %v317_v29 }
  0x40   : > { %v1132_v32 = vpop.eup %778  ;;  %790 = vpow2.f32 %v319_v30 }
  0x41   : > { %v781_v33 = vpop.eup %780 }
  0x42   : > { %v1134_v34 = vpop.eup %782  ;;  %v321_v35 = vadd.f32 %v781_v33, %v1130_v31 }
  0x43   : > { %v785_v36 = vpop.eup %784  ;;  %v322_v37 = vadd.f32 %v1134_v34, %v1132_v32 }
  0x44   : > { %v787_v38 = vpop.eup %786  ;;  %v323_v39 = vadd.f32 %v785_v36, %v321_v35 }
  0x45   : > { %v789_v40 = vpop.eup %788  ;;  %v324_v41 = vadd.f32 %v787_v38, %v322_v37 }
  0x46   : > { %v791_v42 = vpop.eup %790  ;;  %v325_v43 = vadd.f32 %v789_v40, %v323_v39 }
  0x47   : > { %v326_v44 = vadd.f32 %v791_v42, %v324_v41 }
  0x48   : > { %792 = vrcp.f32 %v325_v43  ;;  %vm332_vm2 = vweird.f32 %v325_v43  ;;  %v338_v50 = vand.u32 2147483648, %v325_v43  ;;  %v336_v53 = vand.u32 2147483647, %v325_v43 }
  0x49   : > { %794 = vrcp.f32 %v326_v44  ;;  %v352_v54 = vand.u32 2147483648, %v326_v44  ;;  %vm346_vm5 = vweird.f32 %v326_v44  ;;  %v350_v56 = vand.u32 2147483647, %v326_v44 }
  0x4a   : > { %v339_v60 = vor.u32 1.1754944e-38, %v338_v50  ;;  %vm337_vm12 = vcmp.eq.f32.partialorder %v336_v53, 8.507059e+37 }
  0x4b   : > { %v353_v1 = vor.u32 1.1754944e-38, %v352_v54  ;;  %vm351_vm15 = vcmp.eq.f32.partialorder %v350_v56, 8.507059e+37 }
  0x4e   : > { %v793_v47 = vpop.eup %792 }
  0x4f   : > { %v795_v48 = vpop.eup %794  ;;  %v328_v49 = vmul.f32 %v793_v47, %v325_v43  ;;  %vm333_vm4 = vweird.f32 %v793_v47 }
  0x50   : > { %v342_v51 = vmul.f32 %v795_v48, %v326_v44  ;;  %vm347_vm6 = vweird.f32 %v795_v48  ;;  %vm1143_vm9 = vmor %vm332_vm2, %vm333_vm4 }
  0x51   : > { %v329_v52 = vsub.f32 1.0, %v328_v49  ;;  %vm1147_vm13 = vmor %vm346_vm5, %vm347_vm6 }
  0x52   : > { %v343_v55 = vsub.f32 1.0, %v342_v51 }
  0x53   : > { %v330_v57 = vmul.f32 %v793_v47, %v329_v52 }
  0x54   : > { %v344_v61 = vmul.f32 %v795_v48, %v343_v55 }
  0x55   : > { %v331_v62 = vadd.f32 %v793_v47, %v330_v57 }
  0x56   : > { %v345_v2 = vadd.f32 %v795_v48, %v344_v61 }
  0x57   : > { %v335_v5 = vsel %vm1143_vm9, %v793_v47, %v331_v62 }
  0x58   : > { %v340_v9 = vsel %vm337_vm12, %v339_v60, %v335_v5  ;;  %v349_v10 = vsel %vm1147_vm13, %v795_v48, %v345_v2 }
  0x59   : > { %v354_v13 = vsel %vm351_vm15, %v353_v1, %v349_v10  ;;  %v355_v14 = vmul.f32 %v1130_v31, %v340_v9  ;;  %v381_v15 = vmul.f32 %v781_v33, %v340_v9  ;;  %v407_v16 = vmul.f32 %v785_v36, %v340_v9  ;;  %v459_v10 = vld [vmem:[%s1110_s21] sm:$0x1] }
  0x5a   : > { %v356_v17 = vmul.f32 %v1132_v32, %v354_v13  ;;  %v382_v18 = vmul.f32 %v1134_v34, %v354_v13  ;;  %v408_v19 = vmul.f32 %v787_v38, %v354_v13  ;;  %v433_v20 = vmul.f32 %v789_v40, %v340_v9 }
  0x5b   : > { %v363_v21 = vmul.f32 %v683_v58, %v355_v14  ;;  %v389_v22 = vmul.f32 %v685_v4, %v381_v15  ;;  %v415_v23 = vmul.f32 %v687_v7, %v407_v16  ;;  %v434_v24 = vmul.f32 %v791_v42, %v354_v13 }
  0x5c   : > { %v364_v25 = vmul.f32 %v684_v3, %v356_v17  ;;  %v390_v26 = vmul.f32 %v686_v6, %v382_v18  ;;  %v416_v27 = vmul.f32 %v688_v8, %v408_v19  ;;  %v441_v28 = vmul.f32 %v689_v11, %v433_v20 }
  0x5d   : > { %v442_v0 = vmul.f32 %v690_v12, %v434_v24  ;;  %v372_v29 = vadd.f32 %v683_v58, %v355_v14  ;;  %v373_v30 = vadd.f32 %v684_v3, %v356_v17  ;;  %v398_v31 = vadd.f32 %v685_v4, %v381_v15  ;;  %v460_v14 = vld [vmem:[%s1110_s21 + $0x1] sm:$0x1]  ;;  %v461_v15 = vld [vmem:[%s1110_s21 + $0x2] sm:$0x1] }
  0x5e   : > { %v365_v33 = vadd.f32 %v364_v25, %v363_v21  ;;  %v391_v35 = vadd.f32 %v390_v26, %v389_v22  ;;  %v417_v36 = vadd.f32 %v416_v27, %v415_v23  ;;  %v399_v32 = vadd.f32 %v686_v6, %v382_v18  ;;  %v462_v23 = vld [vmem:[%s1110_s21 + $0x3] sm:$0x1]  ;;  %v471_v27 = vld [vmem:[%s1120_s23] sm:$0x1] }
  0x5f   : > { %v443_v37 = vadd.f32 %v442_v0, %v441_v28  ;;  %v374_v34 = vadd.f32 %v373_v30, %v372_v29  ;;  %v424_v38 = vadd.f32 %v687_v7, %v407_v16  ;;  %v425_v39 = vadd.f32 %v688_v8, %v408_v19 }
  0x60   : > { %v366_v40 = vrot.slane %v365_v33, 4  ;;  %v392_v41 = vrot.slane %v391_v35, 4  ;;  %v418_v43 = vrot.slane %v417_v36, 4  ;;  %v400_v42 = vadd.f32 %v399_v32, %v398_v31 }
  0x61   : > { %v444_v44 = vrot.slane %v443_v37, 4  ;;  %v375_v45 = vrot.slane %v374_v34, 4  ;;  %v426_v46 = vadd.f32 %v425_v39, %v424_v38  ;;  %v450_v47 = vadd.f32 %v689_v11, %v433_v20 }
  0x62   : > { %v367_v48 = vadd.f32 %v366_v40, %v365_v33  ;;  %v393_v49 = vadd.f32 %v392_v41, %v391_v35  ;;  %v419_v50 = vadd.f32 %v418_v43, %v417_v36  ;;  %v401_v51 = vrot.slane %v400_v42, 4  ;;  %v472_v35 = vld [vmem:[%s1120_s23 + $0x1] sm:$0x1]  ;;  %v474_v43 = vld [vmem:[%s1120_s23 + $0x3] sm:$0x1] }
  0x63   : > { %v445_v52 = vadd.f32 %v444_v44, %v443_v37  ;;  %v376_v53 = vadd.f32 %v375_v45, %v374_v34  ;;  %v427_v54 = vrot.slane %v426_v46, 4  ;;  %v451_v55 = vadd.f32 %v690_v12, %v434_v24  ;;  %v473_v37 = vld [vmem:[%s1120_s23 + $0x2] sm:$0x1] }
  0x64   : > { %v368_v56 = vrot.slane %v367_v48, 2  ;;  %v394_v57 = vrot.slane %v393_v49, 2  ;;  %v420_v58 = vrot.slane %v419_v50, 2  ;;  %v402_v59 = vadd.f32 %v401_v51, %v400_v42 }
  0x65   : > { %v446_v60 = vrot.slane %v445_v52, 2  ;;  %v377_v61 = vrot.slane %v376_v53, 2  ;;  %v428_v62 = vadd.f32 %v427_v54, %v426_v46  ;;  %v452_v63 = vadd.f32 %v451_v55, %v450_v47 }
  0x66   : > { %v369_v1 = vadd.f32 %v368_v56, %v367_v48  ;;  %v395_v2 = vadd.f32 %v394_v57, %v393_v49  ;;  %v421_v3 = vadd.f32 %v420_v58, %v419_v50  ;;  %v403_v4 = vrot.slane %v402_v59, 2 }
  0x67   : > { %v447_v5 = vadd.f32 %v446_v60, %v445_v52  ;;  %v378_v6 = vadd.f32 %v377_v61, %v376_v53  ;;  %v429_v7 = vrot.slane %v428_v62, 2  ;;  %v453_v8 = vrot.slane %v452_v63, 4 }
  0x68   : > { %v370_v9 = vrot.slane %v369_v1, 1  ;;  %v396_v11 = vrot.slane %v395_v2, 1  ;;  %v422_v12 = vrot.slane %v421_v3, 1  ;;  %v404_v13 = vadd.f32 %v403_v4, %v402_v59 }
  0x69   : > { %v448_v16 = vrot.slane %v447_v5, 1  ;;  %v379_v17 = vrot.slane %v378_v6, 1  ;;  %v430_v18 = vadd.f32 %v429_v7, %v428_v62  ;;  %v454_v19 = vadd.f32 %v453_v8, %v452_v63 }
  0x6a   : > { %v371_v20 = vadd.f32 %v370_v9, %v369_v1  ;;  %v397_v21 = vadd.f32 %v396_v11, %v395_v2  ;;  %v423_v22 = vadd.f32 %v422_v12, %v421_v3  ;;  %v405_v24 = vrot.slane %v404_v13, 1 }
  0x6b   : > { %v449_v25 = vadd.f32 %v448_v16, %v447_v5  ;;  %v380_v26 = vadd.f32 %v379_v17, %v378_v6  ;;  %v431_v28 = vrot.slane %v430_v18, 1  ;;  %v455_v0 = vrot.slane %v454_v19, 2 }
  0x6c   : > { %v463_v29 = vadd.f32 %v459_v10, %v371_v20  ;;  %v464_v30 = vadd.f32 %v460_v14, %v397_v21  ;;  %v465_v31 = vadd.f32 %v461_v15, %v423_v22  ;;  %v406_v33 = vadd.f32 %v405_v24, %v404_v13 }
  0x6d   : > { %v466_v36 = vadd.f32 %v462_v23, %v449_v25  ;;  %v432_v32 = vadd.f32 %v431_v28, %v430_v18  ;;  %v456_v34 = vadd.f32 %v455_v0, %v454_v19  ;;  %v475_v38 = vadd.f32 %v471_v27, %v380_v26 }
  0x6e   : > { %467 = vst [vmem:[%s1110_s21] sm:$0x1] %v463_v29  ;;  %v476_v39 = vadd.f32 %v472_v35, %v406_v33 }
  0x6f   : > { %468 = vst [vmem:[%s1110_s21 + $0x1] sm:$0x1] %v464_v30  ;;  %v457_v40 = vrot.slane %v456_v34, 1  ;;  %v477_v41 = vadd.f32 %v473_v37, %v432_v32 }
  0x70   : > { %469 = vst [vmem:[%s1110_s21 + $0x2] sm:$0x1] %v465_v31 }
  0x71   : > { %470 = vst [vmem:[%s1110_s21 + $0x3] sm:$0x1] %v466_v36  ;;  %v458_v42 = vadd.f32 %v457_v40, %v456_v34  ;;  %s876_s21 = scalar_lea.hbm %s1256_s2, 8 }
  0x72   : > { %479 = vst [vmem:[%s1120_s23] sm:$0x1] %v475_v38  ;;  %p878_p8 = scmp.lt.s32.totalorder %s876_s21, %s872_s10 }
  0x73   : > { %480 = vst [vmem:[%s1120_s23 + $0x1] sm:$0x1] %v476_v39  ;;  %v478_v44 = vadd.f32 %v474_v43, %v458_v42 }
  0x74   : > { %481 = vst [vmem:[%s1120_s23 + $0x2] sm:$0x1] %v477_v41  ;;  %p879_p10 = por %p878_p8, %p877_p7 }
  0x75   : > { %482 = vst [vmem:[%s1120_s23 + $0x3] sm:$0x1] %v478_v44 }
  0x76   : > { %p880_p13 = pnand %p879_p10, %p875_p6 }
  0x78   : > { %883 = shalt.err (!%p880_p13)
}
  0x79   : > { %s979_s23 = smov 16   ;;  %s980_s29 = smov 1  }
  0x7a   : > { %703 = dma.vmem_to_hbm [thread:$0]  (%p1052_p9), %s1193_s22, 64, %s503_s7, %s484_s11, %s979_s23, %s979_s23, %s980_s29  }
  0x7b   : > { %s489_s30 = scalar_lea.sflag [#allocation9], %s1093_s8  ;;  %s898_s4 = sshra.s32 %s1202_s9, 4  ;;  %s899_s4 = int_to_ptr.hbm [resolvable:$true] %s898_s4 }
  0x7c   : > { %s900_s5 = scalar_lea.hbm %s899_s4, 4  ;;  %s904_s10 = scalar_lea.hbm %s1257_s3, 8 }
  0x7d   : > { %p901_p0 = scmp.ne.s32.totalorder %s899_s4, %s900_s5  ;;  %p905_p3 = scmp.lt.s32.totalorder %s899_s4, %s1257_s3 }
  0x7e   : > { %p906_p4 = scmp.lt.s32.totalorder %s904_s10, %s900_s5 }
  0x7f   : > { %p902_p1 = pnand %p901_p0, %p1052_p9 }
  0x80   : > { %p907_p5 = por %p906_p4, %p905_p3 }
  0x81   : > { %p903_p2 = pneg %p902_p1 }
  0x83   : > { %p908_p6 = pnand %p907_p5, %p903_p2 }
  0x85   : > { %911 = shalt.err (!%p908_p6)
}
  0x86   : > { %704 = dma.vmem_to_hbm [thread:$0]  (%p1052_p9), %s1200_s15, 64, %s1202_s9, %s489_s30, %s979_s23, %s979_s23, %s980_s29  }
  0x87 PF: > { %s533_s8 = sand.u32 1, %s954_s12   ;;  %p715_p7 = pnand %p665_p12, %p1059_p11 }
  0x88   : > { %s534_s22 = scalar_lea.sflag [#allocation4], %s533_s8 }
  0x89   : > { %p716_p8 = pneg %p715_p7 }
  0x8b   : > { %945 = dma.done.wait (%p716_p8), %s534_s22, 64  }
  0x8c   : > { %947 = vsyncadd (%p716_p8), %s534_s22, 4294967232  ;;  %s544_s7 = scalar_lea.sflag [#allocation9], %s533_s8 }
  0x8d   : > { %949 = dma.done.wait (%p716_p8), %s544_s7, 64  }
  0x8e   : > { %951 = vsyncadd (%p716_p8), %s544_s7, 4294967232  ;;  %s26_s17 = sadd.s32 1, %s974_s17   ;;  %s1269_s12 = smov %s958_s13 }
  0x8f   : > { %p23_p10 = scmp.ge.s32.totalorder %s26_s17, 4   ;;  %s1270_s13 = smov %s962_s14 }
  0x90   : > { %s1271_s14 = smov %s1057_s26  ;;  %s1272_s15 = smov %s970_s16 }
  0x91   : > { %s1273_s16 = smov %s1275_s20  ;;  %25 = sbr.rel (!%p23_p10) target bundleno = 12 (0xc), region = 110 }
  0x96   :  { %550 = vsyncpa [#allocation3], 1 }
  0x97   :  { %552 = vsyncpa [#allocation3 + $0x1], 1 }
  0x98   :  { %553 = vsyncpa [#allocation6], 1 }
  0x99   :  { %555 = vsyncpa [#allocation6 + $0x1], 1 }
  0x9a   :  { %556 = vsyncpa [#allocation4], 1 }
  0x9b   :  { %558 = vsyncpa [#allocation4 + $0x1], 1 }
  0x9c   :  { %559 = vsyncpa [#allocation9], 1 }
  0x9d   :  { %561 = vsyncpa [#allocation9 + $0x1], 1 }

</bundles_post_ra>
